<compile_context>
chip_gen: v5e
topology: v5e:2x2
jax: 0.10.0
libtpu: 0.0.40
codegen_flags: <defaults>
</compile_context>

<pallas_src>
import functools
import math

import jax
import jax.numpy as jnp
from jax import lax
from jax.experimental import pallas as pl
from jax.experimental.pallas import tpu as pltpu


_MASK_VALUE = -0.7 * float(jnp.finfo(jnp.float32).max)


def _round_up(x, m):
    return ((x + m - 1) // m) * m


def _attention_kernel(x_q_ref, x_kv_ref, w_ref, o_ref,
                      q_ref, m_ref, l_ref, acc_ref,
                      *, scale, dp, kv_tile, seq_len, need_mask):
    ki = pl.program_id(1)

    @pl.when(ki == 0)
    def _init():
        # Q projection from the fused weight, computed once per query tile and
        # cached in VMEM scratch for the whole KV reduction.
        q_ref[...] = jnp.dot(x_q_ref[...], w_ref[:, :dp],
                             preferred_element_type=jnp.float32)
        m_ref[...] = jnp.full(m_ref.shape, _MASK_VALUE, jnp.float32)
        l_ref[...] = jnp.zeros(l_ref.shape, jnp.float32)
        acc_ref[...] = jnp.zeros(acc_ref.shape, jnp.float32)

    # Fused K/V projection: a single MXU matmul with N = 2*dp output columns.
    kv = jnp.dot(x_kv_ref[...], w_ref[:, dp:],
                 preferred_element_type=jnp.float32)
    k = kv[:, :dp]
    v = kv[:, dp:]

    # Scores: contract on K's last axis directly (no explicit transpose).
    s = lax.dot_general(q_ref[...], k, (((1,), (1,)), ((), ())),
                        preferred_element_type=jnp.float32) * scale

    if need_mask:  # static flag: only emitted when S was padded
        key_idx = ki * kv_tile + lax.broadcasted_iota(jnp.int32, s.shape, 1)
        s = jnp.where(key_idx < seq_len, s, _MASK_VALUE)

    # Online (flash) softmax update.
    m_prev = m_ref[...]
    m_new = jnp.maximum(m_prev, jnp.max(s, axis=-1, keepdims=True))
    alpha = jnp.exp(m_prev - m_new)
    p = jnp.exp(s - m_new)
    l_ref[...] = alpha * l_ref[...] + jnp.sum(p, axis=-1, keepdims=True)
    acc_ref[...] = alpha * acc_ref[...] + jnp.dot(
        p, v, preferred_element_type=jnp.float32)
    m_ref[...] = m_new

    @pl.when(ki == pl.num_programs(1) - 1)
    def _finalize():
        inv_l = pl.reciprocal(l_ref[...], approx=True)
        o_ref[...] = (acc_ref[...] * inv_l).astype(o_ref.dtype)


def self_attention_v1(x, wq, wk, wv, *, max_tile=256):
    """x: (S, D_in); wq/wk/wv: (D_in, D_out) -> (S, D_out)."""
    s, d_in = x.shape
    d_out = wq.shape[1]
    scale = 1.0 / math.sqrt(d_out)

    # Lane-dense padding of feature dims; sublane/tile-aligned padding of S.
    dp_in = _round_up(d_in, 128)
    dp = _round_up(d_out, 128)
    tile = min(max_tile, _round_up(s, 8))
    sp = _round_up(s, tile)
    need_mask = sp != s

    x_p = jnp.pad(x, ((0, sp - s), (0, dp_in - d_in)))

    def _pad_w(w):
        return jnp.pad(w, ((0, dp_in - d_in), (0, dp - d_out)))

    # Fused, padded QKV weight: (Dp_in, 3*Dp). Zero padding is exact: padded
    # D_in rows multiply padded-zero x columns; padded D_out columns produce
    # zero Q/K/V columns that contribute nothing and are sliced off.
    w_qkv = jnp.concatenate([_pad_w(wq), _pad_w(wk), _pad_w(wv)], axis=1)

    kernel = functools.partial(
        _attention_kernel, scale=scale, dp=dp, kv_tile=tile,
        seq_len=s, need_mask=need_mask)

    grid = (sp // tile, sp // tile)

    out_p = pl.pallas_call(
        kernel,
        out_shape=jax.ShapeDtypeStruct((sp, dp), x.dtype),
        grid_spec=pltpu.PrefetchScalarGridSpec(
            num_scalar_prefetch=0,
            grid=grid,
            in_specs=[
                pl.BlockSpec((tile, dp_in), lambda qi, ki: (qi, 0)),   # x (Q tile)
                pl.BlockSpec((tile, dp_in), lambda qi, ki: (ki, 0)),   # x (K/V tile)
                pl.BlockSpec((dp_in, 3 * dp), lambda qi, ki: (0, 0)),  # fused W_qkv
            ],
            out_specs=pl.BlockSpec((tile, dp), lambda qi, ki: (qi, 0)),
            scratch_shapes=[
                pltpu.VMEM((tile, dp), jnp.float32),   # cached Q
                pltpu.VMEM((tile, 1), jnp.float32),    # running max m
                pltpu.VMEM((tile, 1), jnp.float32),    # running sum l
                pltpu.VMEM((tile, dp), jnp.float32),   # output accumulator
            ]),
        compiler_params=pltpu.CompilerParams(
            dimension_semantics=("parallel", "arbitrary")),
    )(x_p, x_p, w_qkv)

    return out_p[:s, :d_out]


def _reference(x, wq, wk, wv):
    q = x @ wq
    k = x @ wk
    v = x @ wv
    scores = (q @ k.T) / math.sqrt(k.shape[-1])
    return jax.nn.softmax(scores, axis=-1) @ v


if __name__ == "__main__":
    # Shapes consistent with the module: seq=8, in_dim=32, out_dim=32.
    S, IN_DIM, OUT_DIM = 8, 32, 32

    key = jax.random.PRNGKey(0)
    kx, kq, kk, kvk = jax.random.split(key, 4)

    x = jax.random.normal(kx, (S, IN_DIM), dtype=jnp.float32)
    # torch.rand -> uniform [0, 1)
    wq = jax.random.uniform(kq, (IN_DIM, OUT_DIM), dtype=jnp.float32)
    wk = jax.random.uniform(kk, (IN_DIM, OUT_DIM), dtype=jnp.float32)
    wv = jax.random.uniform(kvk, (IN_DIM, OUT_DIM), dtype=jnp.float32)

    out = jax.block_until_ready(self_attention_v1(x, wq, wk, wv))
    ref = _reference(x, wq, wk, wv)
    assert out.shape == (S, OUT_DIM)
    # Tolerance accommodates the approximate (EUP) softmax reciprocal.
    assert jnp.allclose(out, ref, atol=5e-3, rtol=5e-3), (
        f"max abs err = {jnp.max(jnp.abs(out - ref))}"
    )

    # Also exercise the multi-tile flash path (grid > 1, padded/masked S, D).
    S2, IN2, OUT2 = 320, 48, 40
    k2 = jax.random.split(jax.random.PRNGKey(1), 4)
    x2 = jax.random.normal(k2[0], (S2, IN2), dtype=jnp.float32)
    wq2 = 0.1 * jax.random.normal(k2[1], (IN2, OUT2), dtype=jnp.float32)
    wk2 = 0.1 * jax.random.normal(k2[2], (IN2, OUT2), dtype=jnp.float32)
    wv2 = 0.1 * jax.random.normal(k2[3], (IN2, OUT2), dtype=jnp.float32)
    out2 = jax.block_until_ready(self_attention_v1(x2, wq2, wk2, wv2))
    ref2 = _reference(x2, wq2, wk2, wv2)
    assert out2.shape == (S2, OUT2)
    assert jnp.allclose(out2, ref2, atol=5e-3, rtol=5e-3), (
        f"max abs err (tiled) = {jnp.max(jnp.abs(out2 - ref2))}"
    )

    print("KERNEL_OK")
</pallas_src>

<mosaic_0001>
module attributes {stable_mosaic.version = 11 : i64} {
  func.func @_attention_kernel(%arg0: i32, %arg1: i32, %arg2: memref<8x128xf32, #tpu.memory_space<vmem>>, %arg3: memref<8x128xf32, #tpu.memory_space<vmem>>, %arg4: memref<128x384xf32, #tpu.memory_space<vmem>>, %arg5: memref<8x128xf32, #tpu.memory_space<vmem>>, %arg6: memref<8x128xf32, #tpu.memory_space<vmem>>, %arg7: memref<8x1xf32, #tpu.memory_space<vmem>>, %arg8: memref<8x1xf32, #tpu.memory_space<vmem>>, %arg9: memref<8x128xf32, #tpu.memory_space<vmem>>) attributes {dimension_semantics = [#tpu.dimension_semantics<parallel>, #tpu.dimension_semantics<arbitrary>], iteration_bounds = array<i64: 1, 1>, scalar_prefetch = 0 : i64, scratch_operands = 4 : i64, tpu.core_type = #tpu.core_type<tc>, window_params = [{transform_indices = @transform_0, window_bounds = array<i64: 8, 128>}, {transform_indices = @transform_1, window_bounds = array<i64: 8, 128>}, {pipeline_mode = #tpu.pipeline_mode<synchronous>, transform_indices = @transform_2, window_bounds = array<i64: 128, 384>}, {transform_indices = @transform_3, window_bounds = array<i64: 8, 128>}]} {
    %c0_i32 = arith.constant 0 : i32
    %0 = arith.cmpi eq, %arg1, %c0_i32 : i32
    %1 = arith.extui %0 : i1 to i32
    %c0_i32_0 = arith.constant 0 : i32
    %2 = arith.cmpi ne, %1, %c0_i32_0 : i32
    scf.if %2 {
      %c0_24 = arith.constant 0 : index
      %c0_25 = arith.constant 0 : index
      %37 = vector.load %arg2[%c0_24, %c0_25] : memref<8x128xf32, #tpu.memory_space<vmem>>, vector<8x128xf32>
      %c0_26 = arith.constant 0 : index
      %c0_27 = arith.constant 0 : index
      %38 = vector.load %arg4[%c0_26, %c0_27] : memref<128x384xf32, #tpu.memory_space<vmem>>, vector<128x128xf32>
      %cst_28 = arith.constant dense<0.000000e+00> : vector<8x128xf32>
      %39 = tpu.matmul %37, %38, %cst_28 {dimension_numbers = #tpu.dot_dimension_numbers<[1], [0], [0], [1], [0, 0, 1, 1], [], []>} : vector<8x128xf32>, vector<128x128xf32>, vector<8x128xf32> -> vector<8x128xf32>
      %c0_29 = arith.constant 0 : index
      %c0_30 = arith.constant 0 : index
      %40 = vector.load %arg6[%c0_29, %c0_30] : memref<8x128xf32, #tpu.memory_space<vmem>>, vector<8x128xf32>
      tpu.vector_store %arg6[%c0_29, %c0_30], %39 {strides = array<i32>} : memref<8x128xf32, #tpu.memory_space<vmem>>, vector<8x128xf32>,
      %cst_31 = arith.constant -2.38197633E+38 : f32
      %41 = vector.broadcast %cst_31 : f32 to vector<8x1xf32>
      %c0_32 = arith.constant 0 : index
      %c0_33 = arith.constant 0 : index
      %42 = vector.load %arg7[%c0_32, %c0_33] : memref<8x1xf32, #tpu.memory_space<vmem>>, vector<8x1xf32>
      tpu.vector_store %arg7[%c0_32, %c0_33], %41 {strides = array<i32>} : memref<8x1xf32, #tpu.memory_space<vmem>>, vector<8x1xf32>,
      %cst_34 = arith.constant 0.000000e+00 : f32
      %43 = vector.broadcast %cst_34 : f32 to vector<8x1xf32>
      %c0_35 = arith.constant 0 : index
      %c0_36 = arith.constant 0 : index
      %44 = vector.load %arg8[%c0_35, %c0_36] : memref<8x1xf32, #tpu.memory_space<vmem>>, vector<8x1xf32>
      tpu.vector_store %arg8[%c0_35, %c0_36], %43 {strides = array<i32>} : memref<8x1xf32, #tpu.memory_space<vmem>>, vector<8x1xf32>,
      %cst_37 = arith.constant 0.000000e+00 : f32
      %45 = vector.broadcast %cst_37 : f32 to vector<8x128xf32>
      %c0_38 = arith.constant 0 : index
      %c0_39 = arith.constant 0 : index
      %46 = vector.load %arg9[%c0_38, %c0_39] : memref<8x128xf32, #tpu.memory_space<vmem>>, vector<8x128xf32>
      tpu.vector_store %arg9[%c0_38, %c0_39], %45 {strides = array<i32>} : memref<8x128xf32, #tpu.memory_space<vmem>>, vector<8x128xf32>,
    } else {
    }
    %c0 = arith.constant 0 : index
    %c0_1 = arith.constant 0 : index
    %3 = vector.load %arg3[%c0, %c0_1] : memref<8x128xf32, #tpu.memory_space<vmem>>, vector<8x128xf32>
    %c0_2 = arith.constant 0 : index
    %c128 = arith.constant 128 : index
    %4 = vector.load %arg4[%c0_2, %c128] : memref<128x384xf32, #tpu.memory_space<vmem>>, vector<128x256xf32>
    %cst = arith.constant dense<0.000000e+00> : vector<8x256xf32>
    %5 = tpu.matmul %3, %4, %cst {dimension_numbers = #tpu.dot_dimension_numbers<[1], [0], [0], [1], [0, 0, 1, 1], [], []>} : vector<8x128xf32>, vector<128x256xf32>, vector<8x256xf32> -> vector<8x256xf32>
    %6 = vector.extract_strided_slice %5 {offsets = [0, 0], sizes = [8, 128], strides = [1, 1]} : vector<8x256xf32> to vector<8x128xf32>
    %7 = vector.extract_strided_slice %5 {offsets = [0, 128], sizes = [8, 128], strides = [1, 1]} : vector<8x256xf32> to vector<8x128xf32>
    %c0_3 = arith.constant 0 : index
    %c0_4 = arith.constant 0 : index
    %8 = vector.load %arg6[%c0_3, %c0_4] : memref<8x128xf32, #tpu.memory_space<vmem>>, vector<8x128xf32>
    %cst_5 = arith.constant dense<0.000000e+00> : vector<8x8xf32>
    %9 = tpu.matmul %8, %6, %cst_5 {dimension_numbers = #tpu.dot_dimension_numbers<[1], [1], [0], [0], [0, 0, 1, 0], [], []>} : vector<8x128xf32>, vector<8x128xf32>, vector<8x8xf32> -> vector<8x8xf32>
    %cst_6 = arith.constant 0.176776692 : f32
    %10 = vector.broadcast %cst_6 : f32 to vector<8x8xf32>
    %11 = arith.mulf %9, %10 : vector<8x8xf32>
    %c0_7 = arith.constant 0 : index
    %c0_8 = arith.constant 0 : index
    %12 = vector.load %arg7[%c0_7, %c0_8] : memref<8x1xf32, #tpu.memory_space<vmem>>, vector<8x1xf32>
    %cst_9 = arith.constant dense<0xFF800000> : vector<8xf32>
    %13 = vector.multi_reduction <maximumf>, %11, %cst_9 [1] : vector<8x8xf32> to vector<8xf32>
    %14 = vector.shape_cast %13 : vector<8xf32> to vector<8x1xf32>
    %15 = arith.maximumf %12, %14 : vector<8x1xf32>
    %16 = arith.subf %12, %15 : vector<8x1xf32>
    %17 = math.exp %16 : vector<8x1xf32>
    %18 = vector.broadcast %15 : vector<8x1xf32> to vector<8x8xf32>
    %19 = arith.subf %11, %18 : vector<8x8xf32>
    %20 = math.exp %19 : vector<8x8xf32>
    %c0_10 = arith.constant 0 : index
    %c0_11 = arith.constant 0 : index
    %21 = vector.load %arg8[%c0_10, %c0_11] : memref<8x1xf32, #tpu.memory_space<vmem>>, vector<8x1xf32>
    %22 = arith.mulf %17, %21 : vector<8x1xf32>
    %cst_12 = arith.constant dense<0.000000e+00> : vector<8xf32>
    %23 = vector.multi_reduction <add>, %20, %cst_12 [1] : vector<8x8xf32> to vector<8xf32>
    %24 = vector.shape_cast %23 : vector<8xf32> to vector<8x1xf32>
    %25 = arith.addf %22, %24 : vector<8x1xf32>
    %c0_13 = arith.constant 0 : index
    %c0_14 = arith.constant 0 : index
    %26 = vector.load %arg8[%c0_13, %c0_14] : memref<8x1xf32, #tpu.memory_space<vmem>>, vector<8x1xf32>
    tpu.vector_store %arg8[%c0_13, %c0_14], %25 {strides = array<i32>} : memref<8x1xf32, #tpu.memory_space<vmem>>, vector<8x1xf32>,
    %c0_15 = arith.constant 0 : index
    %c0_16 = arith.constant 0 : index
    %27 = vector.load %arg9[%c0_15, %c0_16] : memref<8x128xf32, #tpu.memory_space<vmem>>, vector<8x128xf32>
    %28 = vector.broadcast %17 : vector<8x1xf32> to vector<8x128xf32>
    %29 = arith.mulf %28, %27 : vector<8x128xf32>
    %cst_17 = arith.constant dense<0.000000e+00> : vector<8x128xf32>
    %30 = tpu.matmul %20, %7, %cst_17 {dimension_numbers = #tpu.dot_dimension_numbers<[1], [0], [0], [1], [0, 0, 1, 1], [], []>} : vector<8x8xf32>, vector<8x128xf32>, vector<8x128xf32> -> vector<8x128xf32>
    %31 = arith.addf %29, %30 : vector<8x128xf32>
    %c0_18 = arith.constant 0 : index
    %c0_19 = arith.constant 0 : index
    %32 = vector.load %arg9[%c0_18, %c0_19] : memref<8x128xf32, #tpu.memory_space<vmem>>, vector<8x128xf32>
    tpu.vector_store %arg9[%c0_18, %c0_19], %31 {strides = array<i32>} : memref<8x128xf32, #tpu.memory_space<vmem>>, vector<8x128xf32>,
    %c0_20 = arith.constant 0 : index
    %c0_21 = arith.constant 0 : index
    %33 = vector.load %arg7[%c0_20, %c0_21] : memref<8x1xf32, #tpu.memory_space<vmem>>, vector<8x1xf32>
    tpu.vector_store %arg7[%c0_20, %c0_21], %15 {strides = array<i32>} : memref<8x1xf32, #tpu.memory_space<vmem>>, vector<8x1xf32>,
    %c0_i32_22 = arith.constant 0 : i32
    %34 = arith.cmpi eq, %arg1, %c0_i32_22 : i32
    %35 = arith.extui %34 : i1 to i32
    %c0_i32_23 = arith.constant 0 : i32
    %36 = arith.cmpi ne, %35, %c0_i32_23 : i32
    scf.if %36 {
      %c0_24 = arith.constant 0 : index
      %c0_25 = arith.constant 0 : index
      %37 = vector.load %arg8[%c0_24, %c0_25] : memref<8x1xf32, #tpu.memory_space<vmem>>, vector<8x1xf32>
      %38 = tpu.reciprocal %37 {approx = true} : vector<8x1xf32> -> vector<8x1xf32>
      %c0_26 = arith.constant 0 : index
      %c0_27 = arith.constant 0 : index
      %39 = vector.load %arg9[%c0_26, %c0_27] : memref<8x128xf32, #tpu.memory_space<vmem>>, vector<8x128xf32>
      %40 = vector.broadcast %38 : vector<8x1xf32> to vector<8x128xf32>
      %41 = arith.mulf %39, %40 : vector<8x128xf32>
      %c0_28 = arith.constant 0 : index
      %c0_29 = arith.constant 0 : index
      %42 = vector.load %arg5[%c0_28, %c0_29] : memref<8x128xf32, #tpu.memory_space<vmem>>, vector<8x128xf32>
      tpu.vector_store %arg5[%c0_28, %c0_29], %41 {strides = array<i32>} : memref<8x128xf32, #tpu.memory_space<vmem>>, vector<8x128xf32>,
    } else {
    }
    return
  }
  func.func @transform_0(%arg0: i32, %arg1: i32) -> (i32, i32) {
    %c0_i32 = arith.constant 0 : i32
    %c0_i32_0 = arith.constant 0 : i32
    return %arg0, %c0_i32 : i32, i32
  }
  func.func @transform_1(%arg0: i32, %arg1: i32) -> (i32, i32) {
    %c0_i32 = arith.constant 0 : i32
    %c0_i32_0 = arith.constant 0 : i32
    return %arg1, %c0_i32 : i32, i32
  }
  func.func @transform_2(%arg0: i32, %arg1: i32) -> (i32, i32) {
    %c0_i32 = arith.constant 0 : i32
    %c0_i32_0 = arith.constant 0 : i32
    %c0_i32_1 = arith.constant 0 : i32
    return %c0_i32, %c0_i32_0 : i32, i32
  }
  func.func @transform_3(%arg0: i32, %arg1: i32) -> (i32, i32) {
    %c0_i32 = arith.constant 0 : i32
    %c0_i32_0 = arith.constant 0 : i32
    return %arg0, %c0_i32 : i32, i32
  }
}

</mosaic_0001>

<bundles_post_ra>
// kernel: tpu_custom_call.1
= control target key start
LH: loop header
LB: loop body
LE: loop exit
PB: predicated region body
PF: predicated region fallthrough
CT: control target
= control target key end

     0   :  { %8 = vsyncpa [#allocation7], 0  ;;  %s457_s0 = inlined_call_operand.hbm [shape: f32[8,128], index: 0, kind: input, shape index: {}]   ;;  %s458_s1 = inlined_call_operand.hbm [shape: f32[8,128], index: 1, kind: input, shape index: {}]   ;;  %s459_s2 = inlined_call_operand.hbm [shape: f32[128,384], index: 2, kind: input, shape index: {}]   ;;  %s460_s3 = inlined_call_operand.hbm [shape: f32[8,128], index: 3, kind: output, shape index: {}]  }
   0x1   :  { %9 = vsyncpa [#allocation10], 0  ;;  %s27_s14 = sshll.u32 %s458_s1, 4  ;;  %s28_s14 = int_to_ptr.hbm [resolvable:$true] %s27_s14 }
   0x2   :  { %10 = vsyncpa [#allocation8], 0  ;;  %s409_s15 = smov [#allocation9]   ;;  %s16_s19 = sshll.u32 %s457_s0, 4  ;;  %s17_s19 = int_to_ptr.hbm [resolvable:$true] %s16_s19 }
   0x3   :  { %s29_s16 = sshll.u32 %s409_s15, 4  ;;  %s410_s20 = smov [#allocation6]   ;;  %s30_s16 = int_to_ptr.vmem [resolvable:$true] %s29_s16 }
   0x4   :  { %32 = dma.hbm_to_vmem [thread:$0]  %s28_s14, 128, %s30_s16, [#allocation10]  }
   0x5   :  { %s18_s21 = sshll.u32 %s410_s20, 4  ;;  %s37_s24 = sshll.u32 %s459_s2, 4  ;;  %s19_s21 = int_to_ptr.vmem [resolvable:$true] %s18_s21  ;;  %s38_s24 = int_to_ptr.hbm [resolvable:$true] %s37_s24 }
   0x6   :  { %21 = dma.hbm_to_vmem [thread:$0]  %s17_s19, 128, %s19_s21, [#allocation7]  }
   0x7   :  { %s411_s1 = smov [#allocation11]   ;;  %s412_s26 = smov 384  }
   0x8   :  { %s39_s25 = sshll.u32 %s411_s1, 4  ;;  %s413_s27 = smov 24   ;;  %s40_s25 = int_to_ptr.vmem [resolvable:$true] %s39_s25 }
   0x9   :  { %45 = dma.hbm_to_vmem [thread:$0]  %s38_s24, 6144, %s40_s25, [#allocation10], %s412_s26, %s412_s26, %s413_s27  }
   0xa   :  { %403 = dma.done.wait [#allocation7], 128  }
   0xb   :  { %404 = vsyncadd [#allocation7], 4294967168 }
   0xc   :  { %405 = dma.done.wait [#allocation10], 6272  }
   0xd   :  { %406 = vsyncadd [#allocation10], 4294961024  ;;  %v135_v0 = vld [vmem:[#allocation11 + $0x170] sm:$0xff]  ;;  %v133_v1 = vld [vmem:[#allocation11 + $0x158] sm:$0xff]  ;;  %vm100_vm0 = vcmask 7168   ;;  %vm200_vm1 = vcmask 64512  }
   0xe   :  { %v78_v2 = vld [vmem:[#allocation11 + $0x168] sm:$0xff]  ;;  %137 = vmatpush.msra.mxu1 %v135_v0  ;;  %v77_v3 = vld [vmem:[#allocation11 + $0x150] sm:$0xff]  ;;  %v131_v4 = vld [vmem:[#allocation11 + $0x140] sm:$0xff]  ;;  %v414_v38 = vmov -2.3819763e+38   ;;  %v415_v56 = vmov 0  }
   0xf   :  { %79 = vmatpush.msra.mxu0 %v78_v2  ;;  %v76_v5 = vld [vmem:[#allocation11 + $0x138] sm:$0xff]  ;;  %v129_v6 = vld [vmem:[#allocation11 + $0x128] sm:$0xff]  ;;  %v75_v7 = vld [vmem:[#allocation11 + $0x120] sm:$0xff]  ;;  %101 = vst.msk [vmem:[#allocation3] sm:$0xff] %vm100_vm0, %v414_v38  ;;  %298 = vset.pattern.permute.xlu0 %v415_v56  ;;  %v416_v57 = vmov 0.0   ;;  %s417_s0 = smov [#allocation12]  }
  0x10   :  { %138 = vmatpush.msra.mxu1 %v133_v1  ;;  %v127_v8 = vld [vmem:[#allocation11 + $0x110] sm:$0xff]  ;;  %v74_v9 = vld [vmem:[#allocation11 + $0x108] sm:$0xff]  ;;  %v125_v10 = vld [vmem:[#allocation11 + $0xf8] sm:$0xff]  ;;  %299 = vset.pattern.permute.xlu1 %v415_v56  ;;  %102 = vst.msk [vmem:[#allocation4] sm:$0xff] %vm100_vm0, %v416_v57  ;;  %s275_s2 = sshll.u32 %s417_s0, 4  ;;  %s277_s30 = sshll.u32 %s460_s3, 4  ;;  %s276_s2 = int_to_ptr.vmem [resolvable:$true] %s275_s2  ;;  %s278_s30 = int_to_ptr.hbm [resolvable:$true] %s277_s30 }
  0x11   :  { %80 = vmatpush.msra.mxu0 %v77_v3  ;;  %v73_v11 = vld [vmem:[#allocation11 + $0xf0] sm:$0xff]  ;;  %v123_v12 = vld [vmem:[#allocation11 + $0xe0] sm:$0xff]  ;;  %v72_v13 = vld [vmem:[#allocation11 + $0xd8] sm:$0xff]  ;;  %300 = vset.pattern.permute.xlu2 %v415_v56 }
  0x12   :  { %139 = vmatpush.msra.mxu1 %v131_v4  ;;  %v121_v14 = vld [vmem:[#allocation11 + $0xc8] sm:$0xff]  ;;  %v71_v15 = vld [vmem:[#allocation11 + $0xc0] sm:$0xff]  ;;  %v119_v16 = vld [vmem:[#allocation11 + $0xb0] sm:$0xff] }
  0x13   :  { %81 = vmatpush.msra.mxu0 %v76_v5  ;;  %v70_v17 = vld [vmem:[#allocation11 + $0xa8] sm:$0xff]  ;;  %v117_v18 = vld [vmem:[#allocation11 + $0x98] sm:$0xff]  ;;  %v69_v19 = vld [vmem:[#allocation11 + $0x90] sm:$0xff] }
  0x14   :  { %140 = vmatpush.msra.mxu1 %v129_v6  ;;  %v115_v20 = vld [vmem:[#allocation11 + $0x80] sm:$0xff]  ;;  %v68_v21 = vld [vmem:[#allocation11 + $0x78] sm:$0xff]  ;;  %v113_v22 = vld [vmem:[#allocation11 + $0x68] sm:$0xff] }
  0x15   :  { %82 = vmatpush.msra.mxu0 %v75_v7  ;;  %v67_v23 = vld [vmem:[#allocation11 + $0x60] sm:$0xff]  ;;  %v111_v24 = vld [vmem:[#allocation11 + $0x50] sm:$0xff]  ;;  %v66_v25 = vld [vmem:[#allocation11 + $0x48] sm:$0xff] }
  0x16   :  { %141 = vmatpush.msra.mxu1 %v127_v8  ;;  %v109_v26 = vld [vmem:[#allocation11 + $0x38] sm:$0xff]  ;;  %v65_v27 = vld [vmem:[#allocation11 + $0x30] sm:$0xff]  ;;  %v107_v28 = vld [vmem:[#allocation11 + $0x20] sm:$0xff] }
  0x17   :  { %83 = vmatpush.msra.mxu0 %v74_v9  ;;  %v64_v29 = vld [vmem:[#allocation11 + $0x18] sm:$0xff]  ;;  %v105_v30 = vld [vmem:[#allocation11 + $0x8] sm:$0xff]  ;;  %v63_v31 = vld [vmem:[#allocation11] sm:$0xff] }
  0x18   :  { %142 = vmatpush.msra.mxu1 %v125_v10  ;;  %v104_v32 = vld [vmem:[#allocation9] sm:$0xff]  ;;  %v62_v33 = vld [vmem:[#allocation6] sm:$0xff]  ;;  %v134_v37 = vld [vmem:[#allocation11 + $0x160] sm:$0xff] }
  0x19   :  { %84 = vmatpush.msra.mxu0 %v73_v11  ;;  %v136_v36 = vld [vmem:[#allocation11 + $0x178] sm:$0xff]  ;;  %v132_v39 = vld [vmem:[#allocation11 + $0x148] sm:$0xff]  ;;  %v130_v40 = vld [vmem:[#allocation11 + $0x130] sm:$0xff] }
  0x1a   :  { %143 = vmatpush.msra.mxu1 %v123_v12  ;;  %157 = vmatpush.msra.mxu2 %v136_v36  ;;  %v128_v41 = vld [vmem:[#allocation11 + $0x118] sm:$0xff]  ;;  %v126_v42 = vld [vmem:[#allocation11 + $0x100] sm:$0xff]  ;;  %v124_v43 = vld [vmem:[#allocation11 + $0xe8] sm:$0xff] }
  0x1b   :  { %85 = vmatpush.msra.mxu0 %v72_v13  ;;  %v122_v44 = vld [vmem:[#allocation11 + $0xd0] sm:$0xff]  ;;  %v120_v45 = vld [vmem:[#allocation11 + $0xb8] sm:$0xff]  ;;  %v118_v46 = vld [vmem:[#allocation11 + $0xa0] sm:$0xff] }
  0x1c   :  { %144 = vmatpush.msra.mxu1 %v121_v14  ;;  %158 = vmatpush.msra.mxu2 %v134_v37  ;;  %v116_v47 = vld [vmem:[#allocation11 + $0x88] sm:$0xff]  ;;  %v114_v48 = vld [vmem:[#allocation11 + $0x70] sm:$0xff]  ;;  %v112_v49 = vld [vmem:[#allocation11 + $0x58] sm:$0xff] }
  0x1d   :  { %86 = vmatpush.msra.mxu0 %v71_v15  ;;  %v110_v50 = vld [vmem:[#allocation11 + $0x40] sm:$0xff]  ;;  %v108_v51 = vld [vmem:[#allocation11 + $0x28] sm:$0xff]  ;;  %v106_v53 = vld [vmem:[#allocation11 + $0x10] sm:$0xff] }
  0x1e   :  { %145 = vmatpush.msra.mxu1 %v119_v16  ;;  %159 = vmatpush.msra.mxu2 %v132_v39  ;;  %v199_v58 = vld [vmem:[#allocation3] sm:$0xff]  ;;  %v216_v6 = vld [vmem:[#allocation4] sm:$0xff] }
  0x1f   :  { %87 = vmatpush.msra.mxu0 %v70_v17 }
  0x20   :  { %146 = vmatpush.msra.mxu1 %v117_v18  ;;  %160 = vmatpush.msra.mxu2 %v130_v40 }
  0x21   :  { %88 = vmatpush.msra.mxu0 %v69_v19 }
  0x22   :  { %147 = vmatpush.msra.mxu1 %v115_v20  ;;  %161 = vmatpush.msra.mxu2 %v128_v41 }
  0x23   :  { %89 = vmatpush.msra.mxu0 %v68_v21 }
  0x24   :  { %148 = vmatpush.msra.mxu1 %v113_v22  ;;  %162 = vmatpush.msra.mxu2 %v126_v42 }
  0x25   :  { %90 = vmatpush.msra.mxu0 %v67_v23 }
  0x26   :  { %149 = vmatpush.msra.mxu1 %v111_v24  ;;  %163 = vmatpush.msra.mxu2 %v124_v43 }
  0x27   :  { %91 = vmatpush.msra.mxu0 %v66_v25 }
  0x28   :  { %150 = vmatpush.msra.mxu1 %v109_v26  ;;  %164 = vmatpush.msra.mxu2 %v122_v44 }
  0x29   :  { %92 = vmatpush.msra.mxu0 %v65_v27 }
  0x2a   :  { %151 = vmatpush.msra.mxu1 %v107_v28  ;;  %165 = vmatpush.msra.mxu2 %v120_v45 }
  0x2b   :  { %93 = vmatpush.msra.mxu0 %v64_v29 }
  0x2c   :  { %152 = vmatpush.msra.mxu1 %v105_v30  ;;  %166 = vmatpush.msra.mxu2 %v118_v46 }
  0x2d   :  { %94 = vmatpush.msra.mxu0 %v63_v31  ;;  %153 = vmatmul.f32.vlgmr.msra.gmra.mxu1 %v104_v32 }
  0x2e   :  { %95 = vmatmul.f32.vlgmr.msra.gmra.mxu0 %v62_v33  ;;  %167 = vmatpush.msra.mxu2 %v116_v47 }
  0x30   :  { %168 = vmatpush.msra.mxu2 %v114_v48 }
  0x32   :  { %169 = vmatpush.msra.mxu2 %v112_v49 }
  0x34   :  { %170 = vmatpush.msra.mxu2 %v110_v50 }
  0x36   :  { %171 = vmatpush.msra.mxu2 %v108_v51 }
  0x38   :  { %172 = vmatpush.msra.mxu2 %v106_v53 }
  0x39   :  { %173 = vmatmul.f32.vlgmr.msra.gmra.mxu2 %v104_v32 }
  0xaa   :  { %v154_v34 = vpop.f32.mrf.mxu1 }
  0xab   :  { %193 = vmatpush.xpose.msra.mxu3 %v154_v34  ;;  %v96_v35 = vpop.f32.mrf.mxu0 }
  0xae   :  { %194 = vmatmul.f32.vlgmr.msra.gmra.mxu3 %v96_v35 }
  0xbc   :  { %v174_v62 = vpop.f32.mrf.mxu2 }
  0xbd   :  { %249 = vmatpush.msrb.mxu3 %v174_v62 }
 0x131   :  { %v195_v52 = vpop.f32.mrf.mxu3 }
 0x132   :  { %v198_v54 = vmul.f32 0.17677669, %v195_v52 }
 0x134   :  { %v201_v55 = vsel %vm200_vm1, %v198_v54, -inf }
 0x135   :  { %202 = vmax.xlane.f32.xlu0 %v201_v55 }
 0x1a8   :  { %v203_v59 = vpop.xlane.xlu0 %202 }
 0x1a9   :  { %v204_v60 = vmax.f32 %v199_v58, %v203_v59 }
 0x1ab   :  { %v205_v61 = vsub.f32 %v199_v58, %v204_v60  ;;  %256 = vst.msk [vmem:[#allocation3] sm:$0xff] %vm100_vm0, %v204_v60  ;;  %210 = vperm.xlu0 %298, %v204_v60  }
 0x1ad   :  { %v206_v4 = vmul.f32 1.442695, %v205_v61 }
 0x21d   :  { %v211_v63 = vpop.permute.xlu0 %210 }
 0x21e   :  { %v213_v0 = vsub.f32 %v198_v54, %v211_v63 }
 0x220   :  { %v214_v1 = vmul.f32 1.442695, %v213_v0 }
 0x222   :  { %301 = vpow2.f32 %v214_v1 }
 0x223   :  { %303 = vpow2.f32 %v206_v4 }
 0x228   :  { %v302_v2 = vpop.eup %301 }
 0x229   :  { %288 = vmatmul.msk.f32.vlgmr.msrb.gmra.mxu3 %vm200_vm1, %v302_v2  ;;  %v218_v3 = vsel %vm200_vm1, %v302_v2, 0.0  ;;  %v304_v5 = vpop.eup %303 }
 0x22a   :  { %219 = vadd.xlane.f32.xlu1 %v218_v3  ;;  %v217_v7 = vmul.f32 %v304_v5, %v216_v6 }
 0x243   :  { %227 = vperm.xlu1 %299, %v304_v5  }
 0x29d   :  { %v220_v8 = vpop.xlane.xlu1 %219 }
 0x29e   :  { %v221_v9 = vadd.f32 %v220_v8, %v217_v7 }
 0x2a0   :  { %223 = vst.msk [vmem:[#allocation4] sm:$0xff] %vm100_vm0, %v221_v9 }
 0x2a7   :  { %v260_v10 = vld [vmem:[#allocation4] sm:$0xff] }
 0x2a8   :  { %305 = vrcp.f32 %v260_v10 }
 0x2ac   :  { %v251_v14 = vpop.f32.mrf.mxu3 }
 0x2ae   :  { %v306_v11 = vpop.eup %305 }
 0x2af   :  { %265 = vperm.xlu2 %300, %v306_v11  }
 0x2b5   :  { %v228_v12 = vpop.permute.xlu1 %227 }
 0x2b6   :  { %v230_v13 = vmul.f32 0.0, %v228_v12 }
 0x2b8   :  { %v254_v15 = vadd.f32 %v251_v14, %v230_v13 }
 0x309   :  { %v266_v16 = vpop.permute.xlu2 %265 }
 0x30a   :  { %v268_v17 = vmul.f32 %v266_v16, %v254_v15 }
 0x30c   :  { %269 = vst [vmem:[#allocation12] sm:$0xff] %v268_v17 }
 0x30d   :  { %280 = dma.vmem_to_hbm [thread:$0]  %s276_s2, 128, %s278_s30, [#allocation8]  }
 0x30e   :  { %407 = dma.done.wait [#allocation8], 128  }
 0x30f   :  { %408 = vsyncadd [#allocation8], 4294967168 }
 0x310   :  { %285 = vsyncpa [#allocation7], 1 }
 0x311   :  { %286 = vsyncpa [#allocation10], 1 }
 0x312   :  { %287 = vsyncpa [#allocation8], 1 }

</bundles_post_ra>
